<compile_context>
chip_gen: v6e
topology: v6e:2x2x1
jax: 0.10.0
libtpu: 0.0.40
codegen_flags: <defaults>
</compile_context>

<pallas_src>
import functools

import jax
import jax.numpy as jnp
from jax.experimental import pallas as pl
from jax.experimental.pallas import tpu as pltpu

_LANES = 128


def _silu(x):
    # Exact SiLU in f32: x * sigmoid(x) = x / (1 + exp(-x)).
    return x / (1.0 + jnp.exp(-x))


def _mlp_kernel(p_ref, x_ref, o_ref):
    """Fused per-pixel MLP over a lane-dense pixel tile.

    p_ref : (28,) f32 in SMEM -- packed [w1(9), b1(3), w2(9), b2(3), w3(3), b3(1)]
    x_ref : (1, 3, R, 128) VMEM -- three input-channel planes, pixels dense on (sublane, lane)
    o_ref : (1, 1, R, 128) VMEM
    """
    x0 = x_ref[0, 0, :, :]
    x1 = x_ref[0, 1, :, :]
    x2 = x_ref[0, 2, :, :]

    # Layer 1: 3 -> 3 (weights w1[c, k] at p[3c + k], bias b1[c] at p[9 + c]).
    h = []
    for c in range(3):
        acc = (p_ref[3 * c + 0] * x0
               + p_ref[3 * c + 1] * x1
               + p_ref[3 * c + 2] * x2
               + p_ref[9 + c])
        h.append(_silu(acc))

    # Layer 2: 3 -> 3 (w2[c, k] at p[12 + 3c + k], b2[c] at p[21 + c]).
    g = []
    for c in range(3):
        acc = (p_ref[12 + 3 * c + 0] * h[0]
               + p_ref[12 + 3 * c + 1] * h[1]
               + p_ref[12 + 3 * c + 2] * h[2]
               + p_ref[21 + c])
        g.append(_silu(acc))

    # Layer 3: 3 -> 1 (w3[0, k] at p[24 + k], b3 at p[27]).
    acc = p_ref[24] * g[0] + p_ref[25] * g[1] + p_ref[26] * g[2] + p_ref[27]
    o_ref[0, 0, :, :] = _silu(acc)


def _round_up(a, b):
    return (a + b - 1) // b * b


@functools.partial(jax.jit, static_argnames=("rows_per_tile",))
def mymodel_forward(x_nchw, params, rows_per_tile=1024):
    """x_nchw: (N, 3, H, W) float32. Returns (N, 1, H, W) float32."""
    w1, b1, w2, b2, w3, b3 = params
    n, c_in, hh, ww = x_nchw.shape
    p = hh * ww

    # Free reshape: NCHW channel planes are already contiguous pixel runs.
    x = x_nchw.reshape(n, c_in, p)

    p_pad = _round_up(p, _LANES)
    if p_pad != p:
        # Rare ragged-spatial case: one pad pass, sliced off after the kernel.
        x = jnp.pad(x, ((0, 0), (0, 0), (0, p_pad - p)))
    rows = p_pad // _LANES
    x4 = x.reshape(n, c_in, rows, _LANES)

    # Tile rows: multiple of 8 (or equal to the full row count).
    r = rows if rows < rows_per_tile else rows_per_tile
    num_row_tiles = pl.cdiv(rows, r)

    # Pack the 28 scalars for SMEM.
    packed = jnp.concatenate([
        w1.reshape(-1), b1.reshape(-1),
        w2.reshape(-1), b2.reshape(-1),
        w3.reshape(-1), b3.reshape(-1),
    ]).astype(jnp.float32)

    out = pl.pallas_call(
        _mlp_kernel,
        out_shape=jax.ShapeDtypeStruct((n, 1, rows, _LANES), jnp.float32),
        grid_spec=pltpu.PrefetchScalarGridSpec(
            num_scalar_prefetch=0,
            grid=(n, num_row_tiles),
            in_specs=[
                pl.BlockSpec(memory_space=pltpu.MemorySpace.SMEM),      # packed params
                pl.BlockSpec((1, c_in, r, _LANES), lambda b, i: (b, 0, i, 0)),
            ],
            out_specs=pl.BlockSpec((1, 1, r, _LANES), lambda b, i: (b, 0, i, 0)),
        ),
        compiler_params=pltpu.CompilerParams(
            dimension_semantics=("parallel", "parallel"),
        ),
    )(packed, x4)

    out = out.reshape(n, 1, p_pad)
    if p_pad != p:
        out = out[:, :, :p]
    return out.reshape(n, 1, hh, ww)


def init_params(key):
    """Deterministic init matching Conv2d(3,3,1), Conv2d(3,3,1), Conv2d(3,1,1).

    Weights are stored PyTorch-style as (out, in); biases as (out,).
    """
    k1, k2, k3, k4, k5, k6 = jax.random.split(key, 6)
    bound = 1.0 / jnp.sqrt(3.0)  # kaiming-uniform-ish bound for fan_in=3
    w1 = jax.random.uniform(k1, (3, 3), jnp.float32, -bound, bound)
    b1 = jax.random.uniform(k2, (3,), jnp.float32, -bound, bound)
    w2 = jax.random.uniform(k3, (3, 3), jnp.float32, -bound, bound)
    b2 = jax.random.uniform(k4, (3,), jnp.float32, -bound, bound)
    w3 = jax.random.uniform(k5, (1, 3), jnp.float32, -bound, bound)
    b3 = jax.random.uniform(k6, (1,), jnp.float32, -bound, bound)
    return (w1, b1, w2, b2, w3, b3)


def _reference(x_nchw, params):
    """Pure-JAX reference of the same forward (for correctness check)."""
    w1, b1, w2, b2, w3, b3 = params

    def conv1x1(x, w, b):
        return jnp.einsum("oi,nihw->nohw", w, x) + b[None, :, None, None]

    h = jax.nn.silu(conv1x1(x_nchw, w1, b1))
    h = jax.nn.silu(conv1x1(h, w2, b2))
    h = jax.nn.silu(conv1x1(h, w3, b3))
    return h


if __name__ == "__main__":
    key = jax.random.PRNGKey(0)
    kx, kp = jax.random.split(key)

    x = jax.random.normal(kx, (2, 3, 16, 16), dtype=jnp.float32)
    params = init_params(kp)

    out = jax.block_until_ready(mymodel_forward(x, params))

    ref = _reference(x, params)
    assert out.shape == (2, 1, 16, 16), out.shape
    assert jnp.allclose(out, ref, atol=1e-5, rtol=1e-5), float(
        jnp.max(jnp.abs(out - ref))
    )

    print("KERNEL_OK")
</pallas_src>

<mosaic_0001>
module attributes {stable_mosaic.version = 11 : i64} {
  func.func @_mlp_kernel(%arg0: i32, %arg1: i32, %arg2: memref<28xf32, #tpu.memory_space<smem>>, %arg3: memref<1x3x2x128xf32, #tpu.memory_space<vmem>>, %arg4: memref<1x1x2x128xf32, #tpu.memory_space<vmem>>) attributes {dimension_semantics = [#tpu.dimension_semantics<parallel>, #tpu.dimension_semantics<parallel>], iteration_bounds = array<i64: 2, 1>, scalar_prefetch = 0 : i64, scratch_operands = 0 : i64, tpu.core_type = #tpu.core_type<tc>, window_params = [{transform_indices = @transform_0, window_bounds = array<i64: 28>}, {transform_indices = @transform_1, window_bounds = array<i64: 1, 3, 2, 128>}, {transform_indices = @transform_2, window_bounds = array<i64: 1, 1, 2, 128>}]} {
    %c0 = arith.constant 0 : index
    %c0_0 = arith.constant 0 : index
    %c0_1 = arith.constant 0 : index
    %c0_2 = arith.constant 0 : index
    %0 = vector.load %arg3[%c0, %c0_0, %c0_1, %c0_2] : memref<1x3x2x128xf32, #tpu.memory_space<vmem>>, vector<1x1x2x128xf32>
    %1 = vector.shape_cast %0 : vector<1x1x2x128xf32> to vector<2x128xf32>
    %c0_3 = arith.constant 0 : index
    %c1 = arith.constant 1 : index
    %c0_4 = arith.constant 0 : index
    %c0_5 = arith.constant 0 : index
    %2 = vector.load %arg3[%c0_3, %c1, %c0_4, %c0_5] : memref<1x3x2x128xf32, #tpu.memory_space<vmem>>, vector<1x1x2x128xf32>
    %3 = vector.shape_cast %2 : vector<1x1x2x128xf32> to vector<2x128xf32>
    %c0_6 = arith.constant 0 : index
    %c2 = arith.constant 2 : index
    %c0_7 = arith.constant 0 : index
    %c0_8 = arith.constant 0 : index
    %4 = vector.load %arg3[%c0_6, %c2, %c0_7, %c0_8] : memref<1x3x2x128xf32, #tpu.memory_space<vmem>>, vector<1x1x2x128xf32>
    %5 = vector.shape_cast %4 : vector<1x1x2x128xf32> to vector<2x128xf32>
    %c0_9 = arith.constant 0 : index
    %6 = memref.load %arg2[%c0_9] : memref<28xf32, #tpu.memory_space<smem>>
    %7 = vector.broadcast %6 : f32 to vector<2x128xf32>
    %8 = arith.mulf %7, %1 : vector<2x128xf32>
    %c1_10 = arith.constant 1 : index
    %9 = memref.load %arg2[%c1_10] : memref<28xf32, #tpu.memory_space<smem>>
    %10 = vector.broadcast %9 : f32 to vector<2x128xf32>
    %11 = arith.mulf %10, %3 : vector<2x128xf32>
    %12 = arith.addf %8, %11 : vector<2x128xf32>
    %c2_11 = arith.constant 2 : index
    %13 = memref.load %arg2[%c2_11] : memref<28xf32, #tpu.memory_space<smem>>
    %14 = vector.broadcast %13 : f32 to vector<2x128xf32>
    %15 = arith.mulf %14, %5 : vector<2x128xf32>
    %16 = arith.addf %12, %15 : vector<2x128xf32>
    %c9 = arith.constant 9 : index
    %17 = memref.load %arg2[%c9] : memref<28xf32, #tpu.memory_space<smem>>
    %18 = vector.broadcast %17 : f32 to vector<2x128xf32>
    %19 = arith.addf %16, %18 : vector<2x128xf32>
    %cst = arith.constant 0.000000e+00 : f32
    %20 = vector.broadcast %cst : f32 to vector<2x128xf32>
    %21 = arith.subf %20, %19 : vector<2x128xf32>
    %22 = math.exp %21 : vector<2x128xf32>
    %cst_12 = arith.constant 1.000000e+00 : f32
    %23 = vector.broadcast %cst_12 : f32 to vector<2x128xf32>
    %24 = arith.addf %23, %22 : vector<2x128xf32>
    %25 = arith.divf %19, %24 : vector<2x128xf32>
    %c3 = arith.constant 3 : index
    %26 = memref.load %arg2[%c3] : memref<28xf32, #tpu.memory_space<smem>>
    %27 = vector.broadcast %26 : f32 to vector<2x128xf32>
    %28 = arith.mulf %27, %1 : vector<2x128xf32>
    %c4 = arith.constant 4 : index
    %29 = memref.load %arg2[%c4] : memref<28xf32, #tpu.memory_space<smem>>
    %30 = vector.broadcast %29 : f32 to vector<2x128xf32>
    %31 = arith.mulf %30, %3 : vector<2x128xf32>
    %32 = arith.addf %28, %31 : vector<2x128xf32>
    %c5 = arith.constant 5 : index
    %33 = memref.load %arg2[%c5] : memref<28xf32, #tpu.memory_space<smem>>
    %34 = vector.broadcast %33 : f32 to vector<2x128xf32>
    %35 = arith.mulf %34, %5 : vector<2x128xf32>
    %36 = arith.addf %32, %35 : vector<2x128xf32>
    %c10 = arith.constant 10 : index
    %37 = memref.load %arg2[%c10] : memref<28xf32, #tpu.memory_space<smem>>
    %38 = vector.broadcast %37 : f32 to vector<2x128xf32>
    %39 = arith.addf %36, %38 : vector<2x128xf32>
    %cst_13 = arith.constant 0.000000e+00 : f32
    %40 = vector.broadcast %cst_13 : f32 to vector<2x128xf32>
    %41 = arith.subf %40, %39 : vector<2x128xf32>
    %42 = math.exp %41 : vector<2x128xf32>
    %cst_14 = arith.constant 1.000000e+00 : f32
    %43 = vector.broadcast %cst_14 : f32 to vector<2x128xf32>
    %44 = arith.addf %43, %42 : vector<2x128xf32>
    %45 = arith.divf %39, %44 : vector<2x128xf32>
    %c6 = arith.constant 6 : index
    %46 = memref.load %arg2[%c6] : memref<28xf32, #tpu.memory_space<smem>>
    %47 = vector.broadcast %46 : f32 to vector<2x128xf32>
    %48 = arith.mulf %47, %1 : vector<2x128xf32>
    %c7 = arith.constant 7 : index
    %49 = memref.load %arg2[%c7] : memref<28xf32, #tpu.memory_space<smem>>
    %50 = vector.broadcast %49 : f32 to vector<2x128xf32>
    %51 = arith.mulf %50, %3 : vector<2x128xf32>
    %52 = arith.addf %48, %51 : vector<2x128xf32>
    %c8 = arith.constant 8 : index
    %53 = memref.load %arg2[%c8] : memref<28xf32, #tpu.memory_space<smem>>
    %54 = vector.broadcast %53 : f32 to vector<2x128xf32>
    %55 = arith.mulf %54, %5 : vector<2x128xf32>
    %56 = arith.addf %52, %55 : vector<2x128xf32>
    %c11 = arith.constant 11 : index
    %57 = memref.load %arg2[%c11] : memref<28xf32, #tpu.memory_space<smem>>
    %58 = vector.broadcast %57 : f32 to vector<2x128xf32>
    %59 = arith.addf %56, %58 : vector<2x128xf32>
    %cst_15 = arith.constant 0.000000e+00 : f32
    %60 = vector.broadcast %cst_15 : f32 to vector<2x128xf32>
    %61 = arith.subf %60, %59 : vector<2x128xf32>
    %62 = math.exp %61 : vector<2x128xf32>
    %cst_16 = arith.constant 1.000000e+00 : f32
    %63 = vector.broadcast %cst_16 : f32 to vector<2x128xf32>
    %64 = arith.addf %63, %62 : vector<2x128xf32>
    %65 = arith.divf %59, %64 : vector<2x128xf32>
    %c12 = arith.constant 12 : index
    %66 = memref.load %arg2[%c12] : memref<28xf32, #tpu.memory_space<smem>>
    %67 = vector.broadcast %66 : f32 to vector<2x128xf32>
    %68 = arith.mulf %67, %25 : vector<2x128xf32>
    %c13 = arith.constant 13 : index
    %69 = memref.load %arg2[%c13] : memref<28xf32, #tpu.memory_space<smem>>
    %70 = vector.broadcast %69 : f32 to vector<2x128xf32>
    %71 = arith.mulf %70, %45 : vector<2x128xf32>
    %72 = arith.addf %68, %71 : vector<2x128xf32>
    %c14 = arith.constant 14 : index
    %73 = memref.load %arg2[%c14] : memref<28xf32, #tpu.memory_space<smem>>
    %74 = vector.broadcast %73 : f32 to vector<2x128xf32>
    %75 = arith.mulf %74, %65 : vector<2x128xf32>
    %76 = arith.addf %72, %75 : vector<2x128xf32>
    %c21 = arith.constant 21 : index
    %77 = memref.load %arg2[%c21] : memref<28xf32, #tpu.memory_space<smem>>
    %78 = vector.broadcast %77 : f32 to vector<2x128xf32>
    %79 = arith.addf %76, %78 : vector<2x128xf32>
    %cst_17 = arith.constant 0.000000e+00 : f32
    %80 = vector.broadcast %cst_17 : f32 to vector<2x128xf32>
    %81 = arith.subf %80, %79 : vector<2x128xf32>
    %82 = math.exp %81 : vector<2x128xf32>
    %cst_18 = arith.constant 1.000000e+00 : f32
    %83 = vector.broadcast %cst_18 : f32 to vector<2x128xf32>
    %84 = arith.addf %83, %82 : vector<2x128xf32>
    %85 = arith.divf %79, %84 : vector<2x128xf32>
    %c15 = arith.constant 15 : index
    %86 = memref.load %arg2[%c15] : memref<28xf32, #tpu.memory_space<smem>>
    %87 = vector.broadcast %86 : f32 to vector<2x128xf32>
    %88 = arith.mulf %87, %25 : vector<2x128xf32>
    %c16 = arith.constant 16 : index
    %89 = memref.load %arg2[%c16] : memref<28xf32, #tpu.memory_space<smem>>
    %90 = vector.broadcast %89 : f32 to vector<2x128xf32>
    %91 = arith.mulf %90, %45 : vector<2x128xf32>
    %92 = arith.addf %88, %91 : vector<2x128xf32>
    %c17 = arith.constant 17 : index
    %93 = memref.load %arg2[%c17] : memref<28xf32, #tpu.memory_space<smem>>
    %94 = vector.broadcast %93 : f32 to vector<2x128xf32>
    %95 = arith.mulf %94, %65 : vector<2x128xf32>
    %96 = arith.addf %92, %95 : vector<2x128xf32>
    %c22 = arith.constant 22 : index
    %97 = memref.load %arg2[%c22] : memref<28xf32, #tpu.memory_space<smem>>
    %98 = vector.broadcast %97 : f32 to vector<2x128xf32>
    %99 = arith.addf %96, %98 : vector<2x128xf32>
    %cst_19 = arith.constant 0.000000e+00 : f32
    %100 = vector.broadcast %cst_19 : f32 to vector<2x128xf32>
    %101 = arith.subf %100, %99 : vector<2x128xf32>
    %102 = math.exp %101 : vector<2x128xf32>
    %cst_20 = arith.constant 1.000000e+00 : f32
    %103 = vector.broadcast %cst_20 : f32 to vector<2x128xf32>
    %104 = arith.addf %103, %102 : vector<2x128xf32>
    %105 = arith.divf %99, %104 : vector<2x128xf32>
    %c18 = arith.constant 18 : index
    %106 = memref.load %arg2[%c18] : memref<28xf32, #tpu.memory_space<smem>>
    %107 = vector.broadcast %106 : f32 to vector<2x128xf32>
    %108 = arith.mulf %107, %25 : vector<2x128xf32>
    %c19 = arith.constant 19 : index
    %109 = memref.load %arg2[%c19] : memref<28xf32, #tpu.memory_space<smem>>
    %110 = vector.broadcast %109 : f32 to vector<2x128xf32>
    %111 = arith.mulf %110, %45 : vector<2x128xf32>
    %112 = arith.addf %108, %111 : vector<2x128xf32>
    %c20 = arith.constant 20 : index
    %113 = memref.load %arg2[%c20] : memref<28xf32, #tpu.memory_space<smem>>
    %114 = vector.broadcast %113 : f32 to vector<2x128xf32>
    %115 = arith.mulf %114, %65 : vector<2x128xf32>
    %116 = arith.addf %112, %115 : vector<2x128xf32>
    %c23 = arith.constant 23 : index
    %117 = memref.load %arg2[%c23] : memref<28xf32, #tpu.memory_space<smem>>
    %118 = vector.broadcast %117 : f32 to vector<2x128xf32>
    %119 = arith.addf %116, %118 : vector<2x128xf32>
    %cst_21 = arith.constant 0.000000e+00 : f32
    %120 = vector.broadcast %cst_21 : f32 to vector<2x128xf32>
    %121 = arith.subf %120, %119 : vector<2x128xf32>
    %122 = math.exp %121 : vector<2x128xf32>
    %cst_22 = arith.constant 1.000000e+00 : f32
    %123 = vector.broadcast %cst_22 : f32 to vector<2x128xf32>
    %124 = arith.addf %123, %122 : vector<2x128xf32>
    %125 = arith.divf %119, %124 : vector<2x128xf32>
    %c24 = arith.constant 24 : index
    %126 = memref.load %arg2[%c24] : memref<28xf32, #tpu.memory_space<smem>>
    %127 = vector.broadcast %126 : f32 to vector<2x128xf32>
    %128 = arith.mulf %127, %85 : vector<2x128xf32>
    %c25 = arith.constant 25 : index
    %129 = memref.load %arg2[%c25] : memref<28xf32, #tpu.memory_space<smem>>
    %130 = vector.broadcast %129 : f32 to vector<2x128xf32>
    %131 = arith.mulf %130, %105 : vector<2x128xf32>
    %132 = arith.addf %128, %131 : vector<2x128xf32>
    %c26 = arith.constant 26 : index
    %133 = memref.load %arg2[%c26] : memref<28xf32, #tpu.memory_space<smem>>
    %134 = vector.broadcast %133 : f32 to vector<2x128xf32>
    %135 = arith.mulf %134, %125 : vector<2x128xf32>
    %136 = arith.addf %132, %135 : vector<2x128xf32>
    %c27 = arith.constant 27 : index
    %137 = memref.load %arg2[%c27] : memref<28xf32, #tpu.memory_space<smem>>
    %138 = vector.broadcast %137 : f32 to vector<2x128xf32>
    %139 = arith.addf %136, %138 : vector<2x128xf32>
    %cst_23 = arith.constant 0.000000e+00 : f32
    %140 = vector.broadcast %cst_23 : f32 to vector<2x128xf32>
    %141 = arith.subf %140, %139 : vector<2x128xf32>
    %142 = math.exp %141 : vector<2x128xf32>
    %cst_24 = arith.constant 1.000000e+00 : f32
    %143 = vector.broadcast %cst_24 : f32 to vector<2x128xf32>
    %144 = arith.addf %143, %142 : vector<2x128xf32>
    %145 = arith.divf %139, %144 : vector<2x128xf32>
    %c0_25 = arith.constant 0 : index
    %c0_26 = arith.constant 0 : index
    %c0_27 = arith.constant 0 : index
    %c0_28 = arith.constant 0 : index
    %146 = vector.load %arg4[%c0_25, %c0_26, %c0_27, %c0_28] : memref<1x1x2x128xf32, #tpu.memory_space<vmem>>, vector<1x1x2x128xf32>
    %147 = vector.shape_cast %146 : vector<1x1x2x128xf32> to vector<2x128xf32>
    %148 = vector.shape_cast %145 : vector<2x128xf32> to vector<1x1x2x128xf32>
    tpu.vector_store %arg4[%c0_25, %c0_26, %c0_27, %c0_28], %148 {strides = array<i32>} : memref<1x1x2x128xf32, #tpu.memory_space<vmem>>, vector<1x1x2x128xf32>,
    return
  }
  func.func @transform_0(%arg0: i32, %arg1: i32) -> i32 {
    %c0_i32 = arith.constant 0 : i32
    %c0_i32_0 = arith.constant 0 : i32
    return %c0_i32 : i32
  }
  func.func @transform_1(%arg0: i32, %arg1: i32) -> (i32, i32, i32, i32) {
    %c0_i32 = arith.constant 0 : i32
    %c0_i32_0 = arith.constant 0 : i32
    %c0_i32_1 = arith.constant 0 : i32
    return %arg0, %c0_i32, %arg1, %c0_i32_0 : i32, i32, i32, i32
  }
  func.func @transform_2(%arg0: i32, %arg1: i32) -> (i32, i32, i32, i32) {
    %c0_i32 = arith.constant 0 : i32
    %c0_i32_0 = arith.constant 0 : i32
    %c0_i32_1 = arith.constant 0 : i32
    return %arg0, %c0_i32, %arg1, %c0_i32_0 : i32, i32, i32, i32
  }
}

</mosaic_0001>

<bundles_post_ra>
// kernel: mymodel_forward.1
= control target key start
LH: loop header
LB: loop body
LE: loop exit
PB: predicated region body
PF: predicated region fallthrough
CT: control target
= control target key end

     0   :  { %7 = vsyncpa [#allocation3], 0  ;;  %s586_s9 = smov 0   ;;  %s588_s10 = smov 0   ;;  %s655_s0 = inlined_call_operand.vmem [shape: f32[28], index: 0, kind: input, shape index: {}]   ;;  %s656_s1 = inlined_call_operand.vmem [shape: f32[2,3,2,128], index: 1, kind: input, shape index: {}]   ;;  %s657_s2 = inlined_call_operand.vmem [shape: f32[2,1,2,128], index: 2, kind: output, shape index: {}]  }
   0x1   :  { %s590_s11 = smov 0  }
   0x2 LB: > { %s423_s12 = sadd.s32 4294967295, %s568_s11   ;;  %s25_s13 = sadd.s32 1, %s564_s10  ;;  %s568_s11 = sphi %s590_s11, %s13_s11   ;;  %s564_s10 = sphi %s588_s10, %s661_s10   ;;  %s560_s9 = sphi %s586_s9, %s660_s9  }
   0x3   : > { %p27_p0 = scmp.ge.s32.totalorder %s25_s13, 2  ;;  %p425_p1 = scmp.ge.s32.totalorder %s568_s11, 1 }
   0x4   : > { %p107_p2 = scmp.lt.s32.totalorder %s568_s11, 3  ;;  %p611_p4 = scmp.eq.s32.totalorder %s423_s12, 0 }
   0x5   : > { %s663_s13 = smov (%p27_p0, %s25_s13), 0  ;;  %s120_s18 = sshll.u32 %s655_s0, 4  ;;  %s121_s18 = int_to_ptr.vmem [resolvable:$true] %s120_s18 }
   0x6   : > { %p607_p3 = pnand %p425_p1, %p107_p2  ;;  %s527_s19 = scalar_lea.vmem %s121_s18, 16 }
   0x7   : > { %p528_p7 = scmp.ne.s32.totalorder %s121_s18, %s527_s19  ;;  %p535_p11 = scmp.lt.s32.totalorder %s121_s18, %s121_s18 }
   0x8   : > { %p468_p5 = pneg %p607_p3  ;;  %p536_p12 = scmp.lt.s32.totalorder %s527_s19, %s527_s19 }
   0xa   : > { %p469_p6 = pnand %p611_p4, %p468_p5  ;;  %p537_p13 = por %p536_p12, %p535_p11 }
   0xc   : > { %p529_p8 = pneg %p469_p6 }
   0xe   : > { %p530_p9 = pnand %p529_p8, %p528_p7 }
  0x10   : > { %p531_p10 = pneg %p530_p9 }
  0x12   : > { %p538_p0 = pnand %p537_p13, %p531_p10 }
  0x14   : > { %541 = shalt.err (!%p538_p0)
}
  0x15   : > { %s570_s20 = smov [#allocation2]   ;;  %144 = sbr.rel (%p607_p3) target bundleno = 178 (0xb2), region = 28 }
  0x16   : > { %471 = dma.vmem_to_smem (!%p469_p6), %s121_s18, 16, %s570_s20, [#allocation3]  }
  0x1a   : > { %555 = dma.done.wait (%p611_p4), [#allocation3], 16  }
  0x1b   : > { %557 = vsyncadd (%p611_p4), [#allocation3], 4294967280 }
  0x1c   : > { %150 = sfence }
  0x1d   : > { %p172_p1 = scmp.lt.s32.totalorder %s560_s9, 1  ;;  %s192_s21 = sld [smem:[#allocation2]] }
  0x1e   : > { %s434_s22 = sld [smem:[#allocation2 + $0x1]] }
  0x1f   : > { %s665_s9 = smov (!%p172_p1, %s560_s9), 1  ;;  %s435_s23 = sld [smem:[#allocation2 + $0x2]] }
  0x20   : > { %s463_s24 = smul.u32 6, %s665_s9  ;;  %s436_s25 = sld [smem:[#allocation2 + $0x9]] }
  0x21   : > { %s437_s29 = sld [smem:[#allocation2 + $0x3]] }
  0x22   : > { %s179_s28 = scalar_lea.vmem %s656_s1, %s463_s24  ;;  %s438_s30 = sld [smem:[#allocation2 + $0x4]] }
  0x23   : > { %v193_v0 = vstv %s192_s21  ;;  %v187_v1 = vld [vmem:[%s179_s28] sm:$0x3]  ;;  %v432_v2 = vld [vmem:[%s179_s28 + $0x2] sm:$0x3]  ;;  %v433_v3 = vld [vmem:[%s179_s28 + $0x4] sm:$0x3] }
  0x24   : > { %v196_v4 = vstv %s434_s22  ;;  %v194_v5 = vmul.f32 %v193_v0, %v187_v1  ;;  %s439_s3 = sld [smem:[#allocation2 + $0x5]] }
  0x25   : > { %v197_v6 = vmul.f32 %v432_v2, %v196_v4  ;;  %v200_v7 = vstv %s435_s23  ;;  %s440_s4 = sld [smem:[#allocation2 + $0xa]] }
  0x26   : > { %v201_v9 = vmul.f32 %v433_v3, %v200_v7  ;;  %v204_v10 = vstv %s436_s25  ;;  %s441_s5 = sld [smem:[#allocation2 + $0x6]] }
  0x27   : > { %v198_v8 = vadd.f32 %v197_v6, %v194_v5  ;;  %v213_v12 = vstv %s437_s29  ;;  %s442_s6 = sld [smem:[#allocation2 + $0x7]]  ;;  %s431_s29 = sshll.u32 %s665_s9, 1 }
  0x28   : > { %v214_v13 = vmul.f32 %v213_v12, %v187_v1  ;;  %s443_s7 = sld [smem:[#allocation2 + $0x8]]  ;;  %v216_v15 = vstv %s438_s30 }
  0x29   : > { %v202_v11 = vadd.f32 %v201_v9, %v198_v8  ;;  %s444_s8 = sld [smem:[#allocation2 + $0xb]]  ;;  %v217_v16 = vmul.f32 %v432_v2, %v216_v15 }
  0x2a   : > { %v220_v17 = vstv %s439_s3  ;;  %s445_s12 = sld [smem:[#allocation2 + $0xc]] }
  0x2b   : > { %v205_v14 = vadd.f32 %v204_v10, %v202_v11  ;;  %v221_v19 = vmul.f32 %v433_v3, %v220_v17  ;;  %v218_v20 = vadd.f32 %v217_v16, %v214_v13  ;;  %v224_v23 = vstv %s440_s4  ;;  %s446_s14 = sld [smem:[#allocation2 + $0xd]]  ;;  %s186_s4 = scalar_lea.vmem %s657_s2, %s431_s29 }
  0x2c   : > { %v233_v21 = vstv %s441_s5  ;;  %s449_s15 = sld [smem:[#allocation2 + $0xf]] }
  0x2d   : > { %v206_v18 = vsub.f32 0.0, %v205_v14  ;;  %v234_v24 = vmul.f32 %v233_v21, %v187_v1  ;;  %v236_v25 = vstv %s442_s6  ;;  %v222_v26 = vadd.f32 %v221_v19, %v218_v20  ;;  %s453_s16 = sld [smem:[#allocation2 + $0x12]] }
  0x2e   : > { %v237_v27 = vmul.f32 %v432_v2, %v236_v25  ;;  %v240_v28 = vstv %s443_s7  ;;  %s450_s17 = sld [smem:[#allocation2 + $0x10]] }
  0x2f   : > { %v207_v22 = vmul.f32 1.442695, %v206_v18  ;;  %v241_v29 = vmul.f32 %v433_v3, %v240_v28  ;;  %v225_v30 = vadd.f32 %v224_v23, %v222_v26  ;;  %v244_v32 = vstv %s444_s8  ;;  %s454_s18 = sld [smem:[#allocation2 + $0x13]] }
  0x30   : > { %v238_v31 = vadd.f32 %v237_v27, %v234_v24  ;;  %s447_s19 = sld [smem:[#allocation2 + $0xe]]  ;;  %v253_v47 = vstv %s445_s12 }
  0x31   : > { %499 = vpow2.f32 %v207_v22  ;;  %v226_v33 = vsub.f32 0.0, %v225_v30  ;;  %s451_s20 = sld [smem:[#allocation2 + $0x11]]  ;;  %v256_v51 = vstv %s446_s14 }
  0x32   : > { %v242_v34 = vadd.f32 %v241_v29, %v238_v31  ;;  %s455_s21 = sld [smem:[#allocation2 + $0x14]]  ;;  %v273_v48 = vstv %s449_s15 }
  0x33   : > { %v227_v35 = vmul.f32 1.442695, %v226_v33  ;;  %s636_s22 = sld [smem:[#allocation2 + $0x15]]  ;;  %v293_v49 = vstv %s453_s16 }
  0x34   : > { %v245_v36 = vadd.f32 %v244_v32, %v242_v34  ;;  %s638_s23 = sld [smem:[#allocation2 + $0x16]]  ;;  %v276_v52 = vstv %s450_s17 }
  0x35   : > { %501 = vpow2.f32 %v227_v35  ;;  %v296_v53 = vstv %s454_s18  ;;  %s456_s24 = sld [smem:[#allocation2 + $0x17]] }
  0x36   : > { %v246_v37 = vsub.f32 0.0, %v245_v36  ;;  %v260_v62 = vstv %s447_s19  ;;  %s457_s25 = sld [smem:[#allocation2 + $0x18]] }
  0x37   : > { %v280_v63 = vstv %s451_s20  ;;  %s458_s26 = sld [smem:[#allocation2 + $0x19]] }
  0x38   : > { %v247_v38 = vmul.f32 1.442695, %v246_v37  ;;  %v300_v0 = vstv %s455_s21  ;;  %s459_s27 = sld [smem:[#allocation2 + $0x1a]] }
  0x39   : > { %v264_v8 = vstv %s636_s22  ;;  %s460_s28 = sld [smem:[#allocation2 + $0x1b]] }
  0x3a   : > { %503 = vpow2.f32 %v247_v38  ;;  %v284_v9 = vstv %s638_s23 }
  0x3b   : > { %v304_v10 = vstv %s456_s24 }
  0x3d   : > { %v316_v33 = vstv %s458_s26 }
  0x3e   : > { %v500_v39 = vpop.eup %499 }
  0x3f   : > { %v209_v40 = vadd.f32 1.0, %v500_v39 }
  0x41   : > { %505 = vrcp.f32 %v209_v40 }
  0x42   : > { %v502_v41 = vpop.eup %501 }
  0x43   : > { %v229_v42 = vadd.f32 1.0, %v502_v41 }
  0x45   : > { %507 = vrcp.f32 %v229_v42  ;;  %v324_v42 = vstv %s460_s28 }
  0x47   : > { %v504_v43 = vpop.eup %503 }
  0x48   : > { %v249_v44 = vadd.f32 1.0, %v504_v43 }
  0x4a   : > { %509 = vrcp.f32 %v249_v44 }
  0x4e   : > { %v506_v45 = vpop.eup %505 }
  0x4f   : > { %v211_v46 = vmul.f32 %v506_v45, %v205_v14 }
  0x51   : > { %v254_v55 = vmul.f32 %v253_v47, %v211_v46  ;;  %v274_v56 = vmul.f32 %v273_v48, %v211_v46  ;;  %v294_v57 = vmul.f32 %v293_v49, %v211_v46 }
  0x52   : > { %v508_v50 = vpop.eup %507 }
  0x53   : > { %v231_v54 = vmul.f32 %v508_v50, %v225_v30  ;;  %v313_v30 = vstv %s457_s25 }
  0x55   : > { %v257_v58 = vmul.f32 %v256_v51, %v231_v54  ;;  %v277_v59 = vmul.f32 %v276_v52, %v231_v54  ;;  %v297_v60 = vmul.f32 %v296_v53, %v231_v54 }
  0x57   : > { %v510_v61 = vpop.eup %509  ;;  %v258_v2 = vadd.f32 %v257_v58, %v254_v55  ;;  %v278_v3 = vadd.f32 %v277_v59, %v274_v56  ;;  %v298_v4 = vadd.f32 %v297_v60, %v294_v57 }
  0x58   : > { %v251_v1 = vmul.f32 %v510_v61, %v245_v36  ;;  %v320_v36 = vstv %s459_s27 }
  0x5a   : > { %v261_v5 = vmul.f32 %v260_v62, %v251_v1  ;;  %v281_v6 = vmul.f32 %v280_v63, %v251_v1  ;;  %v301_v7 = vmul.f32 %v300_v0, %v251_v1 }
  0x5c   : > { %v262_v11 = vadd.f32 %v261_v5, %v258_v2  ;;  %v282_v12 = vadd.f32 %v281_v6, %v278_v3  ;;  %v302_v13 = vadd.f32 %v301_v7, %v298_v4 }
  0x5e   : > { %v265_v14 = vadd.f32 %v264_v8, %v262_v11  ;;  %v285_v15 = vadd.f32 %v284_v9, %v282_v12  ;;  %v305_v16 = vadd.f32 %v304_v10, %v302_v13 }
  0x60   : > { %v266_v17 = vsub.f32 0.0, %v265_v14  ;;  %v286_v18 = vsub.f32 0.0, %v285_v15  ;;  %v306_v19 = vsub.f32 0.0, %v305_v16 }
  0x62   : > { %v267_v20 = vmul.f32 1.442695, %v266_v17  ;;  %v287_v21 = vmul.f32 1.442695, %v286_v18  ;;  %v307_v22 = vmul.f32 1.442695, %v306_v19 }
  0x64   : > { %511 = vpow2.f32 %v267_v20 }
  0x65   : > { %513 = vpow2.f32 %v287_v21 }
  0x66   : > { %515 = vpow2.f32 %v307_v22 }
  0x71   : > { %v512_v23 = vpop.eup %511 }
  0x72   : > { %v514_v24 = vpop.eup %513  ;;  %v269_v25 = vadd.f32 1.0, %v512_v23 }
  0x73   : > { %v516_v26 = vpop.eup %515  ;;  %v289_v27 = vadd.f32 1.0, %v514_v24 }
  0x74   : > { %517 = vrcp.f32 %v269_v25  ;;  %v309_v28 = vadd.f32 1.0, %v516_v26 }
  0x75   : > { %519 = vrcp.f32 %v289_v27 }
  0x76   : > { %521 = vrcp.f32 %v309_v28 }
  0x81   : > { %v518_v29 = vpop.eup %517 }
  0x82   : > { %v520_v31 = vpop.eup %519  ;;  %v271_v32 = vmul.f32 %v518_v29, %v265_v14 }
  0x83   : > { %v522_v34 = vpop.eup %521  ;;  %v291_v35 = vmul.f32 %v520_v31, %v285_v15 }
  0x84   : > { %v311_v37 = vmul.f32 %v522_v34, %v305_v16  ;;  %v314_v38 = vmul.f32 %v313_v30, %v271_v32 }
  0x85   : > { %v317_v39 = vmul.f32 %v316_v33, %v291_v35 }
  0x86   : > { %v321_v40 = vmul.f32 %v320_v36, %v311_v37 }
  0x87   : > { %v318_v41 = vadd.f32 %v317_v39, %v314_v38 }
  0x89   : > { %v322_v43 = vadd.f32 %v321_v40, %v318_v41 }
  0x8b   : > { %v325_v44 = vadd.f32 %v324_v42, %v322_v43 }
  0x8d   : > { %v326_v45 = vsub.f32 0.0, %v325_v44 }
  0x8f   : > { %v327_v46 = vmul.f32 1.442695, %v326_v45 }
  0x91   : > { %523 = vpow2.f32 %v327_v46 }
  0x9e   : > { %v524_v47 = vpop.eup %523 }
  0x9f   : > { %v329_v48 = vadd.f32 1.0, %v524_v47 }
  0xa1   : > { %525 = vrcp.f32 %v329_v48 }
  0xae   : > { %v526_v49 = vpop.eup %525 }
  0xaf   : > { %v331_v50 = vmul.f32 %v526_v49, %v325_v44 }
  0xb1   : > { %332 = vst [vmem:[%s186_s4] sm:$0x3] %v331_v50 }
  0xb2 PF: > { %s13_s11 = sadd.s32 1, %s568_s11   ;;  %s660_s9 = smov %s564_s10 }
  0xb3   : > { %p10_p2 = scmp.ge.s32.totalorder %s13_s11, 4   ;;  %s661_s10 = smov %s663_s13 }
  0xb5   :  { %12 = sbr.rel (!%p10_p2) target bundleno = 2 (0x2), region = 65 }
  0xba   :  { %358 = vsyncpa [#allocation3], 1 }
  0xbb   :  { %360 = vsyncpa [#allocation3 + $0x1], 1 }

</bundles_post_ra>
